<compile_context>
chip_gen: v5e
topology: v5e:2x2
jax: 0.10.0
libtpu: 0.0.40
codegen_flags: <defaults>
</compile_context>

<pallas_src>
import functools

import jax
import jax.numpy as jnp
from jax.experimental import pallas as pl
from jax.experimental.pallas import tpu as pltpu


def _attn_greedy_kernel(u_ref, ic_ref, wall_ref, ball_ref, out_ref,
                        *, search_num, batch, n_items, hidden):
    # u_ref   : (B, 1, H)           initial user intents
    # ic_ref  : (B*N, D)            flattened item corpus (all batches)
    # wall_ref: (D, S*H)            folded weights   [Wp@Wk | Wp@Wk^2 | ... | Wp@Wk^S]
    # ball_ref: (1, S*H)            folded biases
    # out_ref : (B, 1, (S+1)*H)     flat output slab: [u0 | item_1 | ... | item_S]
    u0 = u_ref[...]                                                    # (B, 1, H)

    # One fat MXU matmul: every step's projected item corpus, for every batch, at once.
    item_all = jnp.dot(ic_ref[...], wall_ref[...],
                       preferred_element_type=jnp.float32) + ball_ref[...]   # (B*N, S*H)

    # Hoisted loop invariant (JAX does not CSE broadcasts inside the unrolled loop).
    row_ids = jax.lax.broadcasted_iota(jnp.int32, (batch, n_items, 1), 1)    # (B, N, 1)

    acc = u0                                  # running sum of user-intent rows
    rows = [u0]

    for i in range(search_num):
        # Step-i item corpus: static lane slice + sublane split (B*N,H) -> (B,N,H).
        item3 = item_all[:, i * hidden:(i + 1) * hidden].reshape(
            batch, n_items, hidden)                                    # (B, N, H)

        # source_vec = mean(user_intent, dim=1)
        source = acc * (1.0 / float(i + 1))                            # (B, 1, H)

        # Attention scores: VPU multiply + lane (H) reduce.  Softmax over items is
        # monotone, so argmax of the raw scores equals argmax of the softmax.
        scores = jnp.sum(item3 * source, axis=2, keepdims=True)        # (B, N, 1)

        # topk(k=1) with first-occurrence tie-break (per batch).
        max_s = jnp.max(scores, axis=1, keepdims=True)                 # (B, 1, 1)
        best = jnp.min(jnp.where(scores >= max_s, row_ids, n_items),
                       axis=1, keepdims=True)                          # (B, 1, 1)
        # Degenerate case (max score is NaN -> no row selected): fall back to row 0.
        # NOTE: differs from torch.topk only when NaNs are present in the scores.
        best = jnp.where(best >= n_items, 0, best)

        # Gather the selected row per batch: masked select + N-sublane XLU reduce
        # (keeps the MXU entirely off the serial chain).
        item_vec = jnp.sum(jnp.where(row_ids == best, item3, 0.0),
                           axis=1, keepdims=True)                      # (B, 1, H)

        acc = acc + item_vec
        rows.append(item_vec)

    # Single store of the whole lane-dense output slab.
    out_ref[...] = jnp.concatenate(rows, axis=-1)                      # (B, 1, (S+1)*H)


def attn_greedy_search(user_intent, item_corpus, w_proj, b_proj, w_k, b_k, search_num):
    bs, hidden = user_intent.shape
    _, n_items, in_dim = item_corpus.shape

    # Fold the proj_k chain into per-step effective weights (wrapper-side; trivial
    # (D,H)x(H,H) / (1,H)x(H,H) matmuls, independent of the greedy selections):
    #   item_i = proj_k^i(proj(ic)) = ic @ (Wp Wk^i) + b_eff_i,
    #   b_eff_0 = bp,  b_eff_i = b_eff_{i-1} @ Wk + bk.
    w_eff, b_eff = [], []
    w_cur, b_cur = w_proj, b_proj
    for _ in range(search_num):
        w_cur = jnp.dot(w_cur, w_k)
        b_cur = jnp.dot(b_cur, w_k) + b_k
        w_eff.append(w_cur)
        b_eff.append(b_cur)
    w_all = jnp.concatenate(w_eff, axis=1)            # (D, S*H)
    b_all = jnp.concatenate(b_eff, axis=1)            # (1, S*H)

    # Wrapper-side layout plumbing (free): flatten items for the fat matmul, present
    # user_intent as (B, 1, H).
    ic_flat = item_corpus.reshape(bs * n_items, in_dim)
    u3 = user_intent.reshape(bs, 1, hidden)

    out_w = (search_num + 1) * hidden
    kernel = functools.partial(_attn_greedy_kernel, search_num=search_num,
                               batch=bs, n_items=n_items, hidden=hidden)

    grid_spec = pltpu.PrefetchScalarGridSpec(
        num_scalar_prefetch=0,
        grid=(1,),  # single fat invocation: whole problem (<32 KB) lives in VMEM
        in_specs=[
            pl.BlockSpec((bs, 1, hidden), lambda i: (0, 0, 0)),
            pl.BlockSpec((bs * n_items, in_dim), lambda i: (0, 0)),
            pl.BlockSpec((in_dim, search_num * hidden), lambda i: (0, 0)),
            pl.BlockSpec((1, search_num * hidden), lambda i: (0, 0)),
        ],
        out_specs=pl.BlockSpec((bs, 1, out_w), lambda i: (0, 0, 0)),
    )

    out_flat = pl.pallas_call(
        kernel,
        out_shape=jax.ShapeDtypeStruct((bs, 1, out_w), jnp.float32),
        grid_spec=grid_spec,
        compiler_params=pltpu.CompilerParams(dimension_semantics=("parallel",)),
    )(u3, ic_flat, w_all, b_all)

    # Wrapper-side reshape back to the module's (B, S+1, H) output.
    return out_flat.reshape(bs, search_num + 1, hidden)


def ref_forward(user_intent, item_corpus, w_proj, b_proj, w_k, b_k, search_num):
    """Pure-JAX reference mirroring the PyTorch forward."""
    bs = user_intent.shape[0]
    item = jnp.einsum("bnd,dh->bnh", item_corpus, w_proj) + b_proj
    u = user_intent[:, None, :]
    for _ in range(search_num):
        item = jnp.einsum("bnh,hk->bnk", item, w_k) + b_k
        src = jnp.mean(u, axis=1, keepdims=True)                    # [B,1,H]
        scores = jnp.einsum("bnh,bkh->bn", item, src)               # [B,N]
        # softmax is monotone; topk(k=1) index == argmax of raw scores
        idx = jnp.argmax(scores, axis=1)                            # [B]
        item_vec = item[jnp.arange(bs)[:, None], idx[:, None], :]   # [B,1,H]
        u = jnp.concatenate([u, item_vec], axis=1)
    return u


if __name__ == "__main__":
    # Shapes implied by the module docstring: user_intent [bs,16], item_corpus [bs,10,100]
    BS, N, D, H, SEARCH_NUM = 2, 10, 100, 16, 3

    key = jax.random.PRNGKey(0)
    k1, k2, k3, k4, k5, k6 = jax.random.split(key, 6)

    user_intent = jax.random.normal(k1, (BS, H), jnp.float32)
    item_corpus = jax.random.normal(k2, (BS, N, D), jnp.float32)

    # Deterministic synthetic parameters (proj: D->H, proj_k: H->H)
    w_proj = jax.random.normal(k3, (D, H), jnp.float32) * 0.1
    b_proj = jax.random.normal(k4, (1, H), jnp.float32) * 0.1
    w_k = jax.random.normal(k5, (H, H), jnp.float32) * 0.1
    b_k = jax.random.normal(k6, (1, H), jnp.float32) * 0.1

    out = attn_greedy_search(user_intent, item_corpus, w_proj, b_proj, w_k, b_k, SEARCH_NUM)
    out = jax.block_until_ready(out)

    ref = ref_forward(user_intent, item_corpus, w_proj, b_proj, w_k, b_k, SEARCH_NUM)
    assert out.shape == (BS, SEARCH_NUM + 1, H), out.shape
    # Weight folding changes f32 accumulation order vs. the reference; tolerance covers it.
    assert jnp.allclose(out, ref, atol=1e-4, rtol=1e-4), "mismatch vs pure-JAX reference"

    print("KERNEL_OK")
</pallas_src>

<mosaic_0001>
module attributes {stable_mosaic.version = 11 : i64} {
  func.func @_attn_greedy_kernel(%arg0: i32, %arg1: memref<2x1x16xf32, #tpu.memory_space<vmem>>, %arg2: memref<20x100xf32, #tpu.memory_space<vmem>>, %arg3: memref<100x48xf32, #tpu.memory_space<vmem>>, %arg4: memref<1x48xf32, #tpu.memory_space<vmem>>, %arg5: memref<2x1x64xf32, #tpu.memory_space<vmem>>) attributes {dimension_semantics = [#tpu.dimension_semantics<parallel>], iteration_bounds = array<i64: 1>, scalar_prefetch = 0 : i64, scratch_operands = 0 : i64, tpu.core_type = #tpu.core_type<tc>, window_params = [{pipeline_mode = #tpu.pipeline_mode<synchronous>, transform_indices = @transform_0, window_bounds = array<i64: 2, 1, 16>}, {pipeline_mode = #tpu.pipeline_mode<synchronous>, transform_indices = @transform_1, window_bounds = array<i64: 20, 100>}, {pipeline_mode = #tpu.pipeline_mode<synchronous>, transform_indices = @transform_2, window_bounds = array<i64: 100, 48>}, {pipeline_mode = #tpu.pipeline_mode<synchronous>, transform_indices = @transform_3, window_bounds = array<i64: 1, 48>}, {pipeline_mode = #tpu.pipeline_mode<synchronous>, transform_indices = @transform_4, window_bounds = array<i64: 2, 1, 64>}]} {
    %c0 = arith.constant 0 : index
    %c0_0 = arith.constant 0 : index
    %c0_1 = arith.constant 0 : index
    %0 = vector.load %arg1[%c0, %c0_0, %c0_1] : memref<2x1x16xf32, #tpu.memory_space<vmem>>, vector<2x1x16xf32>
    %c0_2 = arith.constant 0 : index
    %c0_3 = arith.constant 0 : index
    %1 = vector.load %arg2[%c0_2, %c0_3] : memref<20x100xf32, #tpu.memory_space<vmem>>, vector<20x100xf32>
    %c0_4 = arith.constant 0 : index
    %c0_5 = arith.constant 0 : index
    %2 = vector.load %arg3[%c0_4, %c0_5] : memref<100x48xf32, #tpu.memory_space<vmem>>, vector<100x48xf32>
    %cst = arith.constant dense<0.000000e+00> : vector<20x48xf32>
    %3 = tpu.matmul %1, %2, %cst {dimension_numbers = #tpu.dot_dimension_numbers<[1], [0], [0], [1], [0, 0, 1, 1], [], []>} : vector<20x100xf32>, vector<100x48xf32>, vector<20x48xf32> -> vector<20x48xf32>
    %c0_6 = arith.constant 0 : index
    %c0_7 = arith.constant 0 : index
    %4 = vector.load %arg4[%c0_6, %c0_7] : memref<1x48xf32, #tpu.memory_space<vmem>>, vector<1x48xf32>
    %5 = vector.broadcast %4 : vector<1x48xf32> to vector<20x48xf32>
    %6 = arith.addf %3, %5 : vector<20x48xf32>
    %7 = tpu.iota {dimensions = array<i32: 1>} : vector<2x10x1xi32>
    %8 = vector.extract_strided_slice %6 {offsets = [0, 0], sizes = [20, 16], strides = [1, 1]} : vector<20x48xf32> to vector<20x16xf32>
    %9 = vector.shape_cast %8 : vector<20x16xf32> to vector<2x10x16xf32>
    %cst_8 = arith.constant 1.000000e+00 : f32
    %10 = vector.broadcast %cst_8 : f32 to vector<2x1x16xf32>
    %11 = arith.mulf %0, %10 : vector<2x1x16xf32>
    %12 = vector.broadcast %11 : vector<2x1x16xf32> to vector<2x10x16xf32>
    %13 = arith.mulf %9, %12 : vector<2x10x16xf32>
    %cst_9 = arith.constant dense<0.000000e+00> : vector<2x10xf32>
    %14 = vector.multi_reduction <add>, %13, %cst_9 [2] : vector<2x10x16xf32> to vector<2x10xf32>
    %15 = vector.shape_cast %14 : vector<2x10xf32> to vector<2x10x1xf32>
    %cst_10 = arith.constant dense<0xFF800000> : vector<2x1xf32>
    %16 = vector.multi_reduction <maximumf>, %15, %cst_10 [1] : vector<2x10x1xf32> to vector<2x1xf32>
    %17 = vector.shape_cast %16 : vector<2x1xf32> to vector<2x1x1xf32>
    %18 = vector.broadcast %17 : vector<2x1x1xf32> to vector<2x10x1xf32>
    %19 = arith.cmpf oge, %15, %18 : vector<2x10x1xf32>
    %c10_i32 = arith.constant 10 : i32
    %20 = vector.broadcast %c10_i32 : i32 to vector<2x10x1xi32>
    %21 = arith.select %19, %7, %20 : vector<2x10x1xi1>, vector<2x10x1xi32>
    %cst_11 = arith.constant dense<2147483647> : vector<2x1xi32>
    %22 = vector.multi_reduction <minsi>, %21, %cst_11 [1] : vector<2x10x1xi32> to vector<2x1xi32>
    %23 = vector.shape_cast %22 : vector<2x1xi32> to vector<2x1x1xi32>
    %c10_i32_12 = arith.constant 10 : i32
    %24 = vector.broadcast %c10_i32_12 : i32 to vector<2x1x1xi32>
    %25 = arith.cmpi sge, %23, %24 : vector<2x1x1xi32>
    %c0_i32 = arith.constant 0 : i32
    %26 = vector.broadcast %c0_i32 : i32 to vector<2x1x1xi32>
    %27 = arith.select %25, %26, %23 : vector<2x1x1xi1>, vector<2x1x1xi32>
    %28 = vector.broadcast %27 : vector<2x1x1xi32> to vector<2x10x1xi32>
    %29 = arith.cmpi eq, %7, %28 : vector<2x10x1xi32>
    %cst_13 = arith.constant 0.000000e+00 : f32
    %30 = vector.shape_cast %29 : vector<2x10x1xi1> to vector<2x10x1xi1>
    %31 = vector.broadcast %30 : vector<2x10x1xi1> to vector<2x10x16xi1>
    %32 = vector.broadcast %cst_13 : f32 to vector<2x10x16xf32>
    %33 = arith.select %31, %9, %32 : vector<2x10x16xi1>, vector<2x10x16xf32>
    %cst_14 = arith.constant dense<0.000000e+00> : vector<2x16xf32>
    %34 = vector.multi_reduction <add>, %33, %cst_14 [1] : vector<2x10x16xf32> to vector<2x16xf32>
    %35 = vector.shape_cast %34 : vector<2x16xf32> to vector<2x1x16xf32>
    %36 = arith.addf %0, %35 : vector<2x1x16xf32>
    %37 = vector.extract_strided_slice %6 {offsets = [0, 16], sizes = [20, 16], strides = [1, 1]} : vector<20x48xf32> to vector<20x16xf32>
    %38 = vector.shape_cast %37 : vector<20x16xf32> to vector<2x10x16xf32>
    %cst_15 = arith.constant 5.000000e-01 : f32
    %39 = vector.broadcast %cst_15 : f32 to vector<2x1x16xf32>
    %40 = arith.mulf %36, %39 : vector<2x1x16xf32>
    %41 = vector.broadcast %40 : vector<2x1x16xf32> to vector<2x10x16xf32>
    %42 = arith.mulf %38, %41 : vector<2x10x16xf32>
    %cst_16 = arith.constant dense<0.000000e+00> : vector<2x10xf32>
    %43 = vector.multi_reduction <add>, %42, %cst_16 [2] : vector<2x10x16xf32> to vector<2x10xf32>
    %44 = vector.shape_cast %43 : vector<2x10xf32> to vector<2x10x1xf32>
    %cst_17 = arith.constant dense<0xFF800000> : vector<2x1xf32>
    %45 = vector.multi_reduction <maximumf>, %44, %cst_17 [1] : vector<2x10x1xf32> to vector<2x1xf32>
    %46 = vector.shape_cast %45 : vector<2x1xf32> to vector<2x1x1xf32>
    %47 = vector.broadcast %46 : vector<2x1x1xf32> to vector<2x10x1xf32>
    %48 = arith.cmpf oge, %44, %47 : vector<2x10x1xf32>
    %c10_i32_18 = arith.constant 10 : i32
    %49 = vector.broadcast %c10_i32_18 : i32 to vector<2x10x1xi32>
    %50 = arith.select %48, %7, %49 : vector<2x10x1xi1>, vector<2x10x1xi32>
    %cst_19 = arith.constant dense<2147483647> : vector<2x1xi32>
    %51 = vector.multi_reduction <minsi>, %50, %cst_19 [1] : vector<2x10x1xi32> to vector<2x1xi32>
    %52 = vector.shape_cast %51 : vector<2x1xi32> to vector<2x1x1xi32>
    %c10_i32_20 = arith.constant 10 : i32
    %53 = vector.broadcast %c10_i32_20 : i32 to vector<2x1x1xi32>
    %54 = arith.cmpi sge, %52, %53 : vector<2x1x1xi32>
    %c0_i32_21 = arith.constant 0 : i32
    %55 = vector.broadcast %c0_i32_21 : i32 to vector<2x1x1xi32>
    %56 = arith.select %54, %55, %52 : vector<2x1x1xi1>, vector<2x1x1xi32>
    %57 = vector.broadcast %56 : vector<2x1x1xi32> to vector<2x10x1xi32>
    %58 = arith.cmpi eq, %7, %57 : vector<2x10x1xi32>
    %cst_22 = arith.constant 0.000000e+00 : f32
    %59 = vector.shape_cast %58 : vector<2x10x1xi1> to vector<2x10x1xi1>
    %60 = vector.broadcast %59 : vector<2x10x1xi1> to vector<2x10x16xi1>
    %61 = vector.broadcast %cst_22 : f32 to vector<2x10x16xf32>
    %62 = arith.select %60, %38, %61 : vector<2x10x16xi1>, vector<2x10x16xf32>
    %cst_23 = arith.constant dense<0.000000e+00> : vector<2x16xf32>
    %63 = vector.multi_reduction <add>, %62, %cst_23 [1] : vector<2x10x16xf32> to vector<2x16xf32>
    %64 = vector.shape_cast %63 : vector<2x16xf32> to vector<2x1x16xf32>
    %65 = arith.addf %36, %64 : vector<2x1x16xf32>
    %66 = vector.extract_strided_slice %6 {offsets = [0, 32], sizes = [20, 16], strides = [1, 1]} : vector<20x48xf32> to vector<20x16xf32>
    %67 = vector.shape_cast %66 : vector<20x16xf32> to vector<2x10x16xf32>
    %cst_24 = arith.constant 0.333333343 : f32
    %68 = vector.broadcast %cst_24 : f32 to vector<2x1x16xf32>
    %69 = arith.mulf %65, %68 : vector<2x1x16xf32>
    %70 = vector.broadcast %69 : vector<2x1x16xf32> to vector<2x10x16xf32>
    %71 = arith.mulf %67, %70 : vector<2x10x16xf32>
    %cst_25 = arith.constant dense<0.000000e+00> : vector<2x10xf32>
    %72 = vector.multi_reduction <add>, %71, %cst_25 [2] : vector<2x10x16xf32> to vector<2x10xf32>
    %73 = vector.shape_cast %72 : vector<2x10xf32> to vector<2x10x1xf32>
    %cst_26 = arith.constant dense<0xFF800000> : vector<2x1xf32>
    %74 = vector.multi_reduction <maximumf>, %73, %cst_26 [1] : vector<2x10x1xf32> to vector<2x1xf32>
    %75 = vector.shape_cast %74 : vector<2x1xf32> to vector<2x1x1xf32>
    %76 = vector.broadcast %75 : vector<2x1x1xf32> to vector<2x10x1xf32>
    %77 = arith.cmpf oge, %73, %76 : vector<2x10x1xf32>
    %c10_i32_27 = arith.constant 10 : i32
    %78 = vector.broadcast %c10_i32_27 : i32 to vector<2x10x1xi32>
    %79 = arith.select %77, %7, %78 : vector<2x10x1xi1>, vector<2x10x1xi32>
    %cst_28 = arith.constant dense<2147483647> : vector<2x1xi32>
    %80 = vector.multi_reduction <minsi>, %79, %cst_28 [1] : vector<2x10x1xi32> to vector<2x1xi32>
    %81 = vector.shape_cast %80 : vector<2x1xi32> to vector<2x1x1xi32>
    %c10_i32_29 = arith.constant 10 : i32
    %82 = vector.broadcast %c10_i32_29 : i32 to vector<2x1x1xi32>
    %83 = arith.cmpi sge, %81, %82 : vector<2x1x1xi32>
    %c0_i32_30 = arith.constant 0 : i32
    %84 = vector.broadcast %c0_i32_30 : i32 to vector<2x1x1xi32>
    %85 = arith.select %83, %84, %81 : vector<2x1x1xi1>, vector<2x1x1xi32>
    %86 = vector.broadcast %85 : vector<2x1x1xi32> to vector<2x10x1xi32>
    %87 = arith.cmpi eq, %7, %86 : vector<2x10x1xi32>
    %cst_31 = arith.constant 0.000000e+00 : f32
    %88 = vector.shape_cast %87 : vector<2x10x1xi1> to vector<2x10x1xi1>
    %89 = vector.broadcast %88 : vector<2x10x1xi1> to vector<2x10x16xi1>
    %90 = vector.broadcast %cst_31 : f32 to vector<2x10x16xf32>
    %91 = arith.select %89, %67, %90 : vector<2x10x16xi1>, vector<2x10x16xf32>
    %cst_32 = arith.constant dense<0.000000e+00> : vector<2x16xf32>
    %92 = vector.multi_reduction <add>, %91, %cst_32 [1] : vector<2x10x16xf32> to vector<2x16xf32>
    %93 = vector.shape_cast %92 : vector<2x16xf32> to vector<2x1x16xf32>
    %94 = tpu.concatenate %0, %35, %64, %93 in 2 : vector<2x1x16xf32>, vector<2x1x16xf32>, vector<2x1x16xf32>, vector<2x1x16xf32> -> vector<2x1x64xf32>
    %c0_33 = arith.constant 0 : index
    %c0_34 = arith.constant 0 : index
    %c0_35 = arith.constant 0 : index
    %95 = vector.load %arg5[%c0_33, %c0_34, %c0_35] : memref<2x1x64xf32, #tpu.memory_space<vmem>>, vector<2x1x64xf32>
    tpu.vector_store %arg5[%c0_33, %c0_34, %c0_35], %94 {strides = array<i32>} : memref<2x1x64xf32, #tpu.memory_space<vmem>>, vector<2x1x64xf32>,
    return
  }
  func.func @transform_0(%arg0: i32) -> (i32, i32, i32) {
    %c0_i32 = arith.constant 0 : i32
    %c0_i32_0 = arith.constant 0 : i32
    %c0_i32_1 = arith.constant 0 : i32
    %c0_i32_2 = arith.constant 0 : i32
    return %c0_i32, %c0_i32_0, %c0_i32_1 : i32, i32, i32
  }
  func.func @transform_1(%arg0: i32) -> (i32, i32) {
    %c0_i32 = arith.constant 0 : i32
    %c0_i32_0 = arith.constant 0 : i32
    %c0_i32_1 = arith.constant 0 : i32
    return %c0_i32, %c0_i32_0 : i32, i32
  }
  func.func @transform_2(%arg0: i32) -> (i32, i32) {
    %c0_i32 = arith.constant 0 : i32
    %c0_i32_0 = arith.constant 0 : i32
    %c0_i32_1 = arith.constant 0 : i32
    return %c0_i32, %c0_i32_0 : i32, i32
  }
  func.func @transform_3(%arg0: i32) -> (i32, i32) {
    %c0_i32 = arith.constant 0 : i32
    %c0_i32_0 = arith.constant 0 : i32
    %c0_i32_1 = arith.constant 0 : i32
    return %c0_i32, %c0_i32_0 : i32, i32
  }
  func.func @transform_4(%arg0: i32) -> (i32, i32, i32) {
    %c0_i32 = arith.constant 0 : i32
    %c0_i32_0 = arith.constant 0 : i32
    %c0_i32_1 = arith.constant 0 : i32
    %c0_i32_2 = arith.constant 0 : i32
    return %c0_i32, %c0_i32_0, %c0_i32_1 : i32, i32, i32
  }
}

</mosaic_0001>

<bundles_post_ra>
// kernel: tpu_custom_call.1
= control target key start
LH: loop header
LB: loop body
LE: loop exit
PB: predicated region body
PF: predicated region fallthrough
CT: control target
= control target key end

     0   :  { %vm50_vm0 = vcmask 1043456   ;;  %s1161_s0 = inlined_call_operand.vmem [shape: f32[2,1,16], index: 0, kind: input, shape index: {}]   ;;  %s1162_s1 = inlined_call_operand.vmem [shape: f32[20,100], index: 1, kind: input, shape index: {}]   ;;  %s1163_s2 = inlined_call_operand.vmem [shape: f32[100,48], index: 2, kind: input, shape index: {}]   ;;  %s1164_s3 = inlined_call_operand.vmem [shape: f32[1,48], index: 3, kind: input, shape index: {}]   ;;  %s1165_s4 = inlined_call_operand.hbm [shape: f32[2,1,64], index: 4, kind: output, shape index: {}]  }
   0x1   :  { %v35_v0 = vld [vmem:[%s1163_s2 + $0x60] sm:$0xf]  ;;  %v34_v1 = vld [vmem:[%s1163_s2 + $0x58] sm:$0xff]  ;;  %v33_v2 = vld [vmem:[%s1163_s2 + $0x50] sm:$0xff] }
   0x2   :  { %768 = vmatpush.msk.msra.mxu0 %vm50_vm0, %v35_v0  ;;  %772 = vmatpush.msk.msra.mxu1 %vm50_vm0, %v35_v0  ;;  %v32_v3 = vld [vmem:[%s1163_s2 + $0x48] sm:$0xff]  ;;  %v31_v4 = vld [vmem:[%s1163_s2 + $0x40] sm:$0xff] }
   0x3   :  { %773 = vmatpush.msk.msra.mxu2 %vm50_vm0, %v35_v0 }
   0x4   :  { %58 = vmatpush.msra.mxu0 %v34_v1  ;;  %774 = vmatpush.msra.mxu1 %v34_v1 }
   0x5   :  { %775 = vmatpush.msra.mxu2 %v34_v1 }
   0x6   :  { %59 = vmatpush.msra.mxu0 %v33_v2  ;;  %776 = vmatpush.msra.mxu1 %v33_v2 }
   0x7   :  { %777 = vmatpush.msra.mxu2 %v33_v2 }
   0x8   :  { %9 = vsyncpa [#allocation3], 0  ;;  %60 = vmatpush.msra.mxu0 %v32_v3  ;;  %778 = vmatpush.msra.mxu1 %v32_v3  ;;  %v30_v5 = vld [vmem:[%s1163_s2 + $0x38] sm:$0xff]  ;;  %v29_v6 = vld [vmem:[%s1163_s2 + $0x30] sm:$0xff]  ;;  %vm40_vm1 = vcmask 818176   ;;  %vm164_vm2 = vcmask 123904   ;;  %v80_v0 = vlaneseq }
   0x9   :  { %779 = vmatpush.msra.mxu2 %v32_v3  ;;  %v28_v7 = vld [vmem:[%s1163_s2 + $0x28] sm:$0xff]  ;;  %v27_v8 = vld [vmem:[%s1163_s2 + $0x20] sm:$0xff]  ;;  %v26_v9 = vld [vmem:[%s1163_s2 + $0x18] sm:$0xff]  ;;  %vm160_vm3 = vcmask 130048   ;;  %vm174_vm4 = vcmask 1041408   ;;  %s834_s28 = smov 16  }
   0xa   :  { %61 = vmatpush.msra.mxu0 %v31_v4  ;;  %780 = vmatpush.msra.mxu1 %v31_v4  ;;  %v25_v10 = vld [vmem:[%s1163_s2 + $0x10] sm:$0xff]  ;;  %v24_v11 = vld [vmem:[%s1163_s2 + $0x8] sm:$0xff]  ;;  %v23_v12 = vld [vmem:[%s1163_s2] sm:$0xff]  ;;  %s836_s29 = smov 32   ;;  %s837_s30 = smov 96  }
   0xb   :  { %781 = vmatpush.msra.mxu2 %v31_v4  ;;  %v20_v13 = vld [vmem:[%s1162_s1] sm:$0xff]  ;;  %v21_v14 = vld [vmem:[%s1162_s1 + $0x8] sm:$0xff]  ;;  %v22_v15 = vld [vmem:[%s1162_s1 + $0x10] sm:$0xf]  ;;  %v978_v4 = vshrl.u32 %v80_v0, 7  ;;  %s838_s5 = smov 48  }
   0xc   :  { %62 = vmatpush.msra.mxu0 %v30_v5  ;;  %782 = vmatpush.msra.mxu1 %v30_v5  ;;  %v805_v16 = vld [vmem:[%s1164_s3] ss:$0 sm:$0xff]  ;;  %v807_v35 = vld [vmem:[%s1161_s0 + $0x1] ss:$0 sm:$0xff]  ;;  %s756_s8 = sshll.u32 %s1165_s4, 4  ;;  %s839_s9 = smov [#allocation2]   ;;  %s757_s8 = int_to_ptr.hbm [resolvable:$true] %s756_s8 }
   0xd   :  { %783 = vmatpush.msra.mxu2 %v30_v5  ;;  %v806_v17 = vld [vmem:[%s1161_s0] ss:$0 sm:$0xff]  ;;  %v109_v39 = vrot.slane %v807_v35, 2  ;;  %v111_v40 = vrot.slane %v807_v35, 6  ;;  %v110_v43 = vrot.slane %v807_v35, 4  ;;  %s754_s10 = sshll.u32 %s839_s9, 4  ;;  %s755_s10 = int_to_ptr.vmem [resolvable:$true] %s754_s10 }
   0xe   :  { %63 = vmatpush.msra.mxu0 %v29_v6  ;;  %784 = vmatpush.msra.mxu1 %v29_v6  ;;  %v106_v20 = vrot.slane %v806_v17, 2  ;;  %v107_v21 = vrot.slane %v806_v17, 4  ;;  %v108_v23 = vrot.slane %v806_v17, 6  ;;  %s840_s11 = smov 1  }
   0xf   :  { %785 = vmatpush.msra.mxu2 %v29_v6 }
  0x10   :  { %64 = vmatpush.msra.mxu0 %v28_v7  ;;  %786 = vmatpush.msra.mxu1 %v28_v7 }
  0x11   :  { %787 = vmatpush.msra.mxu2 %v28_v7 }
  0x12   :  { %65 = vmatpush.msra.mxu0 %v27_v8  ;;  %788 = vmatpush.msra.mxu1 %v27_v8 }
  0x13   :  { %789 = vmatpush.msra.mxu2 %v27_v8 }
  0x14   :  { %66 = vmatpush.msra.mxu0 %v26_v9  ;;  %790 = vmatpush.msra.mxu1 %v26_v9 }
  0x15   :  { %791 = vmatpush.msra.mxu2 %v26_v9 }
  0x16   :  { %67 = vmatpush.msra.mxu0 %v25_v10  ;;  %792 = vmatpush.msra.mxu1 %v25_v10 }
  0x17   :  { %793 = vmatpush.msra.mxu2 %v25_v10  ;;  %v981_v10 = vadd.s32 8, %v978_v4 }
  0x18   :  { %68 = vmatpush.msra.mxu0 %v24_v11  ;;  %794 = vmatpush.msra.mxu1 %v24_v11 }
  0x19   :  { %795 = vmatpush.msra.mxu2 %v24_v11 }
  0x1a   :  { %69 = vmatpush.msra.mxu0 %v23_v12  ;;  %796 = vmatpush.msra.mxu1 %v23_v12 }
  0x1b   :  { %797 = vmatpush.msra.mxu2 %v23_v12  ;;  %769 = vmatmul.msk.f32.vlgmr.msra.gmra.mxu0 %vm40_vm1, %v20_v13 }
  0x1c   :  { %770 = vmatmul.msk.f32.vlgmr.msra.gmra.mxu1 %vm40_vm1, %v21_v14  ;;  %771 = vmatmul.msk.f32.vlgmr.msra.gmra.mxu2 %vm40_vm1, %v22_v15 }
  0x98   :  { %v71_v18 = vpop.f32.mrf.mxu0 }
  0x99   :  { %v920_v19 = vadd.f32 %v805_v16, %v71_v18  ;;  %v74_v22 = vpop.f32.mrf.mxu1 }
  0x9a   :  { %v922_v24 = vadd.f32 %v805_v16, %v74_v22 }
  0x9b   :  { %v925_v25 = vrot.slane %v920_v19, 2  ;;  %v928_v26 = vrot.slane %v920_v19, 4  ;;  %v931_v27 = vrot.slane %v920_v19, 6  ;;  %v118_v28 = vmul.f32 %v806_v17, %v920_v19 }
  0x9c   :  { %v122_v29 = vmul.f32 %v806_v17, %v922_v24  ;;  %v947_v37 = vrot.slane %v922_v24, 2  ;;  %v950_v38 = vrot.slane %v922_v24, 4  ;;  %v954_v42 = vrot.slane %v922_v24, 6 }
  0x9d   :  { %v119_v30 = vmul.f32 %v106_v20, %v925_v25  ;;  %v120_v31 = vmul.f32 %v107_v21, %v928_v26  ;;  %138 = vst [vmem:[#allocation1] ss:$4 sm:$0xff] %v118_v28  ;;  %v121_v32 = vmul.f32 %v108_v23, %v931_v27 }
  0x9e   :  { %146 = vst [vmem:[#allocation1 + $0x20] ss:$4 sm:$0xff] %v122_v29  ;;  %v123_v46 = vmul.f32 %v807_v35, %v947_v37  ;;  %v124_v47 = vmul.f32 %v109_v39, %v950_v38  ;;  %v125_v50 = vmul.f32 %v110_v43, %v954_v42 }
  0x9f   :  { %140 = vst [vmem:[#allocation1 + $0x1] ss:$4 sm:$0xff] %v119_v30  ;;  %v77_v33 = vpop.f32.mrf.mxu2 }
  0xa0   :  { %142 = vst [vmem:[#allocation1 + $0x2] ss:$4 sm:$0xff] %v120_v31  ;;  %v938_v34 = vadd.f32 %v805_v16, %v77_v33 }
  0xa1   :  { %144 = vst [vmem:[#allocation1 + $0x3] ss:$4 sm:$0xff] %v121_v32 }
  0xa2   :  { %v944_v36 = vrot.slane %v938_v34, 2  ;;  %v126_v48 = vmul.f32 %v111_v40, %v938_v34 }
  0xa4   :  { %v127_v41 = vmul.f32 %v807_v35, %v944_v36 }
  0xa5   :  { %v148_v44 = vld.sshfl [vmem:[#allocation1 + $0x20] sm:$0xff pattern:$0x73625140] }
  0xa6   :  { %v165_v45 = vsel %vm164_vm2, %v148_v44, 0.0  ;;  %153 = vst [vmem:[#allocation1 + $0x20] ss:$4 sm:$0xff] %v127_v41 }
  0xa7   :  { %166 = vadd.xlane.f32.xlu0 %v165_v45 }
  0xa8   :  { %v147_v49 = vld.sshfl [vmem:[#allocation1] sm:$0xff pattern:$0x73625140] }
  0xa9   :  { %149 = vst [vmem:[#allocation1] ss:$4 sm:$0xff] %v123_v46  ;;  %v161_v53 = vsel %vm160_vm3, %v147_v49, 0.0 }
  0xaa   :  { %150 = vst [vmem:[#allocation1 + $0x1] ss:$4 sm:$0xff] %v124_v47 }
  0xab   :  { %151 = vst [vmem:[#allocation1 + $0x2] ss:$4 sm:$0xff] %v125_v50 }
  0xac   :  { %152 = vst [vmem:[#allocation1 + $0x3] ss:$4 sm:$0xff] %v126_v48 }
  0xad   :  { %v155_v51 = vld.sshfl [vmem:[#allocation1 + $0x20] sm:$0xff pattern:$0x73625140] }
  0xae   :  { %v171_v52 = vsel %vm164_vm2, %v155_v51, 0.0  ;;  %247 = vst [vmem:[#allocation1 + $0x20] ss:$4 sm:$0xff] %v922_v24 }
  0xaf   :  { %172 = vadd.xlane.f32.xlu1 %v171_v52  ;;  %162 = vadd.xlane.f32.xlu0 %v161_v53 }
  0xb3   :  { %v154_v54 = vld.sshfl [vmem:[#allocation1] sm:$0xff pattern:$0x73625140] }
  0xb4   :  { %239 = vst [vmem:[#allocation1] ss:$4 sm:$0xff] %v920_v19  ;;  %v168_v55 = vsel %vm160_vm3, %v154_v54, 0.0 }
  0xb5   :  { %241 = vst [vmem:[#allocation1 + $0x1] ss:$4 sm:$0xff] %v925_v25  ;;  %v969_v56 = vld.sshfl [vmem:[#allocation1 + $0x20] sm:$0xff pattern:$0x73625140] }
  0xb6   :  { %243 = vst [vmem:[#allocation1 + $0x2] ss:$4 sm:$0xff] %v928_v26 }
  0xb7   :  { %245 = vst [vmem:[#allocation1 + $0x3] ss:$4 sm:$0xff] %v931_v27  ;;  %169 = vadd.xlane.f32.xlu1 %v168_v55 }
  0xb8   :  { %254 = vst [vmem:[#allocation1 + $0x20] ss:$4 sm:$0xff] %v944_v36 }
  0xbe   :  { %v248_v57 = vld.sshfl [vmem:[#allocation1] sm:$0xff pattern:$0x73625140] }
  0xbf   :  { %250 = vst [vmem:[#allocation1] ss:$4 sm:$0xff] %v947_v37 }
  0xc0   :  { %251 = vst [vmem:[#allocation1 + $0x1] ss:$4 sm:$0xff] %v950_v38 }
  0xc1   :  { %252 = vst [vmem:[#allocation1 + $0x2] ss:$4 sm:$0xff] %v954_v42 }
  0xc2   :  { %253 = vst [vmem:[#allocation1 + $0x3] ss:$4 sm:$0xff] %v938_v34 }
 0x11a   :  { %v167_v58 = vpop.xlane.xlu0 %166 }
 0x11b   :  { %v175_v59 = vsel %vm174_vm4, %v167_v58, -inf }
 0x122   :  { %v173_v60 = vpop.xlane.xlu1 %172  ;;  %v163_v61 = vpop.xlane.xlu0 %162 }
 0x123   :  { %v176_v62 = vmax.f32 %v163_v61, %v175_v59  ;;  %v183_v2 = vsel %vm174_vm4, %v173_v60, -inf  ;;  %v256_v59 = vld.sshfl [vmem:[#allocation1 + $0x20] sm:$0xff pattern:$0x73625140] }
 0x125   :  { %v177_v63 = vrot.slane %v176_v62, 4 }
 0x127   :  { %v178_v1 = vmax.f32 %v176_v62, %v177_v63 }
 0x129   :  { %v179_v3 = vrot.slane %v178_v1, 2 }
 0x12a   :  { %v170_v5 = vpop.xlane.xlu1 %169 }
 0x12b   :  { %v180_v6 = vmax.f32 %v178_v1, %v179_v3  ;;  %v184_v7 = vmax.f32 %v170_v5, %v183_v2  ;;  %v1001_v3 = vld [vmem:[%s1161_s0] sm:$0x1] }
 0x12d   :  { %v181_v8 = vrot.slane %v180_v6, 1  ;;  %v185_v9 = vrot.slane %v184_v7, 4 }
 0x12f   :  { %v182_v11 = vmax.f32 %v180_v6, %v181_v8  ;;  %v186_v12 = vmax.f32 %v184_v7, %v185_v9 }
 0x131   :  { %vm191_vm5 = vcmp.ge.f32.partialorder %v163_v61, %v182_v11  ;;  %vm192_vm6 = vcmp.ge.f32.partialorder %v167_v58, %v182_v11  ;;  %v187_v13 = vrot.slane %v186_v12, 2  ;;  %v255_v58 = vld.sshfl [vmem:[#allocation1] sm:$0xff pattern:$0x73625140] }
 0x132   :  { %v195_v14 = vsel %vm191_vm5, %v978_v4, 10  ;;  %v196_v15 = vsel %vm192_vm6, %v981_v10, 10 }
 0x133   :  { %v199_v16 = vsel %vm174_vm4, %v196_v15, 2147483647  ;;  %v188_v17 = vmax.f32 %v186_v12, %v187_v13 }
 0x134   :  { %vm200_vm7 = vcmp.lt.s32.totalorder %v195_v14, %v199_v16 }
 0x135   :  { %v201_v18 = vsel %vm200_vm7, %v195_v14, %v199_v16  ;;  %v189_v20 = vrot.slane %v188_v17, 1  ;;  %v1013_v14 = vld [vmem:[%s1161_s0 + $0x1] sm:$0x1]  ;;  %s835_s0 = smov 112  }
 0x136   :  { %v202_v21 = vrot.slane %v201_v18, 4 }
 0x137   :  { %v190_v22 = vmax.f32 %v188_v17, %v189_v20 }
 0x138   :  { %vm203_vm8 = vcmp.lt.s32.totalorder %v201_v18, %v202_v21 }
 0x139   :  { %v204_v23 = vsel %vm203_vm8, %v201_v18, %v202_v21  ;;  %vm193_vm9 = vcmp.ge.f32.partialorder %v170_v5, %v190_v22  ;;  %vm194_vm10 = vcmp.ge.f32.partialorder %v173_v60, %v190_v22 }
 0x13a   :  { %v205_v28 = vrot.slane %v204_v23, 2  ;;  %v197_v29 = vsel %vm193_vm9, %v978_v4, 10  ;;  %v198_v30 = vsel %vm194_vm10, %v981_v10, 10 }
 0x13b   :  { %v211_v31 = vsel %vm174_vm4, %v198_v30, 2147483647 }
 0x13c   :  { %vm206_vm11 = vcmp.lt.s32.totalorder %v204_v23, %v205_v28  ;;  %vm212_vm12 = vcmp.lt.s32.totalorder %v197_v29, %v211_v31 }
 0x13d   :  { %v207_v32 = vsel %vm206_vm11, %v204_v23, %v205_v28  ;;  %v213_v33 = vsel %vm212_vm12, %v197_v29, %v211_v31 }
 0x13e   :  { %v208_v35 = vrot.slane %v207_v32, 1  ;;  %v214_v39 = vrot.slane %v213_v33, 4 }
 0x140   :  { %vm209_vm13 = vcmp.lt.s32.totalorder %v207_v32, %v208_v35  ;;  %vm215_vm14 = vcmp.lt.s32.totalorder %v213_v33, %v214_v39 }
 0x141   :  { %v210_v40 = vsel %vm209_vm13, %v207_v32, %v208_v35  ;;  %v216_v41 = vsel %vm215_vm14, %v213_v33, %v214_v39 }
 0x142   :  { %vm223_vm15 = vcmp.ge.s32.totalorder %v210_v40, 10  ;;  %v217_v43 = vrot.slane %v216_v41, 2 }
 0x143   :  { %v225_v44 = vsel %vm223_vm15, 0, %v210_v40 }
 0x144   :  { %vm227_vm0 = vcmp.eq.s32.totalorder %v978_v4, %v225_v44  ;;  %vm228_vm1 = vcmp.eq.s32.totalorder %v981_v10, %v225_v44  ;;  %vm218_vm5 = vcmp.lt.s32.totalorder %v216_v41, %v217_v43 }
 0x145   :  { %v261_v45 = vsel %vm227_vm0, %v248_v57, 0.0  ;;  %v262_v46 = vsel %vm228_vm1, %v969_v56, 0.0  ;;  %v219_v47 = vsel %vm218_vm5, %v216_v41, %v217_v43 }
 0x146   :  { %v265_v48 = vsel %vm160_vm3, %v261_v45, 0.0  ;;  %v266_v49 = vsel %vm164_vm2, %v262_v46, 0.0  ;;  %v220_v50 = vrot.slane %v219_v47, 1 }
 0x147   :  { %v267_v51 = vadd.f32 %v266_v49, %v265_v48 }
 0x148   :  { %vm221_vm6 = vcmp.lt.s32.totalorder %v219_v47, %v220_v50 }
 0x149   :  { %v222_v52 = vsel %vm221_vm6, %v219_v47, %v220_v50  ;;  %v268_v53 = vrot.slane %v267_v51, 4 }
 0x14a   :  { %vm224_vm7 = vcmp.ge.s32.totalorder %v222_v52, 10 }
 0x14b   :  { %v226_v54 = vsel %vm224_vm7, 0, %v222_v52  ;;  %v269_v55 = vadd.f32 %v268_v53, %v267_v51 }
 0x14c   :  { %vm229_vm8 = vcmp.eq.s32.totalorder %v978_v4, %v226_v54  ;;  %vm230_vm9 = vcmp.eq.s32.totalorder %v981_v10, %v226_v54 }
 0x14d   :  { %v263_v56 = vsel %vm229_vm8, %v255_v58, 0.0  ;;  %v264_v57 = vsel %vm230_vm9, %v256_v59, 0.0  ;;  %v270_v60 = vrot.slane %v269_v55, 2 }
 0x14e   :  { %v274_v61 = vsel %vm160_vm3, %v263_v56, 0.0  ;;  %v275_v62 = vsel %vm164_vm2, %v264_v57, 0.0 }
 0x14f   :  { %v276_v63 = vadd.f32 %v275_v62, %v274_v61  ;;  %v271_v0 = vadd.f32 %v270_v60, %v269_v55 }
 0x151   :  { %v277_v1 = vrot.slane %v276_v63, 4  ;;  %v272_v2 = vrot.slane %v271_v0, 1 }
 0x153   :  { %v278_v5 = vadd.f32 %v277_v1, %v276_v63  ;;  %v1003_v6 = vadd.f32 %v272_v2, %v271_v0 }
 0x155   :  { %v1007_v7 = vadd.f32 %v1003_v6, %v1001_v3  ;;  %v279_v8 = vrot.slane %v278_v5, 2 }
 0x157   :  { %v285_v9 = vmul.f32 0.5, %v1007_v7  ;;  %v280_v11 = vadd.f32 %v279_v8, %v278_v5 }
 0x159   :  { %v289_v12 = vperm.slane %v285_v9, 0  ;;  %v281_v13 = vrot.slane %v280_v11, 1 }
 0x15b   :  { %297 = vrot.lane.b32.xlu2 %v289_v12, %s834_s28  ;;  %v292_v15 = vrot.slane %v289_v12, 4  ;;  %v293_v16 = vrot.slane %v289_v12, 6  ;;  %v1016_v17 = vadd.f32 %v281_v13, %v280_v11  ;;  %v291_v21 = vrot.slane %v289_v12, 2 }
 0x15d   :  { %301 = vrot.lane.b32.xlu0 %v292_v15, %s834_s28  ;;  %303 = vrot.lane.b32.xlu1 %v293_v16, %s834_s28  ;;  %v1022_v18 = vadd.f32 %v1016_v17, %v1013_v14 }
 0x15f   :  { %v286_v20 = vmul.f32 0.5, %v1022_v18 }
 0x161   :  { %v290_v22 = vperm.slane %v286_v20, 0 }
 0x163   :  { %299 = vrot.lane.b32.xlu2 %v291_v21, %s834_s28  ;;  %v296_v23 = vrot.slane %v290_v22, 6  ;;  %v294_v28 = vrot.slane %v290_v22, 2  ;;  %v295_v29 = vrot.slane %v290_v22, 4 }
 0x165   :  { %311 = vrot.lane.b32.xlu0 %v296_v23, %s834_s28 }
 0x16b   :  { %305 = vrot.lane.b32.xlu2 %v290_v22, %s834_s28 }
 0x173   :  { %307 = vrot.lane.b32.xlu2 %v294_v28, %s834_s28 }
 0x17b   :  { %309 = vrot.lane.b32.xlu2 %v295_v29, %s834_s28 }
 0x1b5   :  { %v298_v30 = vpop.permute.xlu2 %297 }
 0x1b6   :  { %v321_v31 = vmul.f32 %v298_v30, %v920_v19  ;;  %v325_v32 = vmul.f32 %v298_v30, %v922_v24 }
 0x1b8   :  { %341 = vst [vmem:[#allocation1] ss:$4 sm:$0xff] %v321_v31 }
 0x1b9   :  { %349 = vst [vmem:[#allocation1 + $0x20] ss:$4 sm:$0xff] %v325_v32 }
 0x1bd   :  { %v300_v33 = vpop.permute.xlu2 %299 }
 0x1be   :  { %v322_v35 = vmul.f32 %v300_v33, %v925_v25 }
 0x1c0   :  { %343 = vst [vmem:[#allocation1 + $0x1] ss:$4 sm:$0xff] %v322_v35  ;;  %v351_v39 = vld.sshfl [vmem:[#allocation1 + $0x20] sm:$0xff pattern:$0x73625140] }
 0x1c1   :  { %361 = vrot.lane.b32.xlu2 %v351_v39, %s835_s0 }
 0x1c5   :  { %v306_v40 = vpop.permute.xlu2 %305 }
 0x1c6   :  { %v330_v41 = vmul.f32 %v306_v40, %v944_v36  ;;  %v326_v52 = vmul.f32 %v306_v40, %v947_v37 }
 0x1c8   :  { %356 = vst [vmem:[#allocation1 + $0x20] ss:$4 sm:$0xff] %v330_v41 }
 0x1cd   :  { %v308_v43 = vpop.permute.xlu2 %307 }
 0x1ce   :  { %v327_v53 = vmul.f32 %v308_v43, %v950_v38 }
 0x1cf   :  { %v302_v44 = vpop.permute.xlu0 %301  ;;  %v304_v45 = vpop.permute.xlu1 %303  ;;  %v358_v46 = vld.sshfl [vmem:[#allocation1 + $0x20] sm:$0xff pattern:$0x73625140] }
 0x1d0   :  { %v323_v47 = vmul.f32 %v302_v44, %v928_v26  ;;  %v324_v48 = vmul.f32 %v304_v45, %v931_v27  ;;  %455 = vst [vmem:[#allocation1 + $0x20] ss:$4 sm:$0xff] %v922_v24  ;;  %365 = vrot.lane.b32.xlu0 %v358_v46, %s835_s0 }
 0x1d2   :  { %345 = vst [vmem:[#allocation1 + $0x2] ss:$4 sm:$0xff] %v323_v47 }
 0x1d3   :  { %347 = vst [vmem:[#allocation1 + $0x3] ss:$4 sm:$0xff] %v324_v48 }
 0x1d5   :  { %v310_v51 = vpop.permute.xlu2 %309 }
 0x1d6   :  { %v328_v58 = vmul.f32 %v310_v51, %v954_v42 }
 0x1d7   :  { %v312_v49 = vpop.permute.xlu0 %311  ;;  %v457_v50 = vld.sshfl [vmem:[#allocation1 + $0x20] sm:$0xff pattern:$0x73625140] }
 0x1d8   :  { %462 = vst [vmem:[#allocation1 + $0x20] ss:$4 sm:$0xff] %v944_v36  ;;  %v329_v55 = vmul.f32 %v312_v49, %v938_v34 }
 0x1da   :  { %v350_v54 = vld.sshfl [vmem:[#allocation1] sm:$0xff pattern:$0x73625140] }
 0x1db   :  { %352 = vst [vmem:[#allocation1] ss:$4 sm:$0xff] %v326_v52  ;;  %359 = vrot.lane.b32.xlu1 %v350_v54, %s835_s0 }
 0x1dc   :  { %353 = vst [vmem:[#allocation1 + $0x1] ss:$4 sm:$0xff] %v327_v53 }
 0x1dd   :  { %354 = vst [vmem:[#allocation1 + $0x2] ss:$4 sm:$0xff] %v328_v58 }
 0x1de   :  { %355 = vst [vmem:[#allocation1 + $0x3] ss:$4 sm:$0xff] %v329_v55 }
 0x1df   :  { %v464_v8 = vld.sshfl [vmem:[#allocation1 + $0x20] sm:$0xff pattern:$0x73625140] }
 0x1e5   :  { %v357_v59 = vld.sshfl [vmem:[#allocation1] sm:$0xff pattern:$0x73625140] }
 0x1e6   :  { %447 = vst [vmem:[#allocation1] ss:$4 sm:$0xff] %v920_v19  ;;  %363 = vrot.lane.b32.xlu2 %v357_v59, %s835_s0 }
 0x1e7   :  { %449 = vst [vmem:[#allocation1 + $0x1] ss:$4 sm:$0xff] %v925_v25 }
 0x1e8   :  { %451 = vst [vmem:[#allocation1 + $0x2] ss:$4 sm:$0xff] %v928_v26 }
 0x1e9   :  { %453 = vst [vmem:[#allocation1 + $0x3] ss:$4 sm:$0xff] %v931_v27 }
 0x1f0   :  { %v456_v56 = vld.sshfl [vmem:[#allocation1] sm:$0xff pattern:$0x73625140] }
 0x1f1   :  { %461 = vst [vmem:[#allocation1 + $0x3] ss:$4 sm:$0xff] %v938_v34 }
 0x1f2   :  { %458 = vst [vmem:[#allocation1] ss:$4 sm:$0xff] %v947_v37 }
 0x1f3   :  { %459 = vst [vmem:[#allocation1 + $0x1] ss:$4 sm:$0xff] %v950_v38 }
 0x1f4   :  { %460 = vst [vmem:[#allocation1 + $0x2] ss:$4 sm:$0xff] %v954_v42 }
 0x1fb   :  { %v463_v5 = vld.sshfl [vmem:[#allocation1] sm:$0xff pattern:$0x73625140] }
 0x21b   :  { %v362_v57 = vpop.permute.xlu2 %361 }
 0x21c   :  { %v374_v60 = vsel %vm164_vm2, %v362_v57, 0.0 }
 0x21d   :  { %375 = vadd.xlane.f32.xlu1 %v374_v60 }
 0x240   :  { %v364_v61 = vpop.permute.xlu2 %363 }
 0x241   :  { %v377_v62 = vsel %vm160_vm3, %v364_v61, 0.0 }
 0x242   :  { %378 = vadd.xlane.f32.xlu1 %v377_v62  ;;  %v366_v63 = vpop.permute.xlu0 %365 }
 0x243   :  { %v380_v0 = vsel %vm164_vm2, %v366_v63, 0.0 }
 0x244   :  { %381 = vadd.xlane.f32.xlu2 %v380_v0 }
 0x24d   :  { %v360_v1 = vpop.permute.xlu1 %359 }
 0x24e   :  { %v371_v2 = vsel %vm160_vm3, %v360_v1, 0.0 }
 0x24f   :  { %372 = vadd.xlane.f32.xlu0 %v371_v2 }
 0x25b   :  { %469 = vrot.lane.b32.xlu1 %v463_v5, %s835_s0 }
 0x25c   :  { %467 = vrot.lane.b32.xlu2 %v457_v50, %s835_s0 }
 0x263   :  { %465 = vrot.lane.b32.xlu0 %v456_v56, %s835_s0 }
 0x26b   :  { %471 = vrot.lane.b32.xlu0 %v464_v8, %s835_s0 }
 0x290   :  { %v376_v9 = vpop.xlane.xlu1 %375 }
 0x291   :  { %v383_v23 = vsel %vm174_vm4, %v376_v9, -inf }
 0x2b5   :  { %v379_v12 = vpop.xlane.xlu1 %378 }
 0x2b7   :  { %v382_v11 = vpop.xlane.xlu2 %381 }
 0x2b8   :  { %v391_v13 = vsel %vm174_vm4, %v382_v11, -inf }
 0x2b9   :  { %v392_v15 = vmax.f32 %v379_v12, %v391_v13 }
 0x2bb   :  { %v393_v16 = vrot.slane %v392_v15, 4 }
 0x2bd   :  { %v394_v20 = vmax.f32 %v392_v15, %v393_v16 }
 0x2bf   :  { %v395_v21 = vrot.slane %v394_v20, 2  ;;  %v468_v16 = vpop.permute.xlu2 %467 }
 0x2c1   :  { %v396_v22 = vmax.f32 %v394_v20, %v395_v21 }
 0x2c2   :  { %v373_v28 = vpop.xlane.xlu0 %372 }
 0x2c3   :  { %v397_v29 = vrot.slane %v396_v22, 1  ;;  %v384_v30 = vmax.f32 %v373_v28, %v383_v23 }
 0x2c5   :  { %v398_v31 = vmax.f32 %v396_v22, %v397_v29  ;;  %v385_v32 = vrot.slane %v384_v30, 4 }
 0x2c7   :  { %vm401_vm10 = vcmp.ge.f32.partialorder %v379_v12, %v398_v31  ;;  %vm402_vm11 = vcmp.ge.f32.partialorder %v382_v11, %v398_v31  ;;  %v386_v33 = vmax.f32 %v384_v30, %v385_v32 }
 0x2c8   :  { %v405_v35 = vsel %vm401_vm10, %v978_v4, 10  ;;  %v406_v39 = vsel %vm402_vm11, %v981_v10, 10 }
 0x2c9   :  { %v419_v40 = vsel %vm174_vm4, %v406_v39, 2147483647  ;;  %v387_v41 = vrot.slane %v386_v33, 2 }
 0x2ca   :  { %vm420_vm12 = vcmp.lt.s32.totalorder %v405_v35, %v419_v40 }
 0x2cb   :  { %v421_v43 = vsel %vm420_vm12, %v405_v35, %v419_v40  ;;  %v388_v44 = vmax.f32 %v386_v33, %v387_v41 }
 0x2cc   :  { %v422_v45 = vrot.slane %v421_v43, 4 }
 0x2cd   :  { %v389_v46 = vrot.slane %v388_v44, 1  ;;  %v470_v62 = vpop.permute.xlu1 %469 }
 0x2ce   :  { %vm423_vm13 = vcmp.lt.s32.totalorder %v421_v43, %v422_v45 }
 0x2cf   :  { %v390_v47 = vmax.f32 %v388_v44, %v389_v46  ;;  %v424_v48 = vsel %vm423_vm13, %v421_v43, %v422_v45 }
 0x2d0   :  { %v425_v49 = vrot.slane %v424_v48, 2 }
 0x2d1   :  { %vm399_vm14 = vcmp.ge.f32.partialorder %v373_v28, %v390_v47  ;;  %vm400_vm15 = vcmp.ge.f32.partialorder %v376_v9, %v390_v47 }
 0x2d2   :  { %v403_v50 = vsel %vm399_vm14, %v978_v4, 10  ;;  %v404_v51 = vsel %vm400_vm15, %v981_v10, 10  ;;  %vm426_vm0 = vcmp.lt.s32.totalorder %v424_v48, %v425_v49 }
 0x2d3   :  { %v407_v52 = vsel %vm174_vm4, %v404_v51, 2147483647  ;;  %v427_v53 = vsel %vm426_vm0, %v424_v48, %v425_v49 }
 0x2d4   :  { %vm408_vm1 = vcmp.lt.s32.totalorder %v403_v50, %v407_v52  ;;  %v428_v54 = vrot.slane %v427_v53, 1 }
 0x2d5   :  { %v409_v55 = vsel %vm408_vm1, %v403_v50, %v407_v52  ;;  %v466_v58 = vpop.permute.xlu0 %465 }
 0x2d6   :  { %v410_v59 = vrot.slane %v409_v55, 4  ;;  %vm429_vm5 = vcmp.lt.s32.totalorder %v427_v53, %v428_v54 }
 0x2d7   :  { %v430_v56 = vsel %vm429_vm5, %v427_v53, %v428_v54 }
 0x2d8   :  { %vm411_vm6 = vcmp.lt.s32.totalorder %v409_v55, %v410_v59  ;;  %vm432_vm7 = vcmp.ge.s32.totalorder %v430_v56, 10 }
 0x2d9   :  { %v412_v57 = vsel %vm411_vm6, %v409_v55, %v410_v59  ;;  %v434_v60 = vsel %vm432_vm7, 0, %v430_v56 }
 0x2da   :  { %v413_v61 = vrot.slane %v412_v57, 2  ;;  %vm437_vm8 = vcmp.eq.s32.totalorder %v978_v4, %v434_v60  ;;  %vm438_vm10 = vcmp.eq.s32.totalorder %v981_v10, %v434_v60 }
 0x2db   :  { %v479_v63 = vsel %vm437_vm8, %v470_v62, 0.0 }
 0x2dc   :  { %vm414_vm9 = vcmp.lt.s32.totalorder %v412_v57, %v413_v61  ;;  %v490_v8 = vsel %vm160_vm3, %v479_v63, 0.0 }
 0x2dd   :  { %v415_v0 = vsel %vm414_vm9, %v412_v57, %v413_v61  ;;  %v472_v1 = vpop.permute.xlu0 %471 }
 0x2de   :  { %v416_v2 = vrot.slane %v415_v0, 1  ;;  %v480_v5 = vsel %vm438_vm10, %v472_v1, 0.0 }
 0x2df   :  { %v491_v9 = vsel %vm164_vm2, %v480_v5, 0.0 }
 0x2e0   :  { %vm417_vm11 = vcmp.lt.s32.totalorder %v415_v0, %v416_v2  ;;  %v492_v11 = vadd.f32 %v491_v9, %v490_v8 }
 0x2e1   :  { %v418_v12 = vsel %vm417_vm11, %v415_v0, %v416_v2 }
 0x2e2   :  { %vm431_vm12 = vcmp.ge.s32.totalorder %v418_v12, 10  ;;  %v493_v13 = vrot.slane %v492_v11, 4 }
 0x2e3   :  { %v433_v15 = vsel %vm431_vm12, 0, %v418_v12 }
 0x2e4   :  { %vm435_vm13 = vcmp.eq.s32.totalorder %v978_v4, %v433_v15  ;;  %vm436_vm14 = vcmp.eq.s32.totalorder %v981_v10, %v433_v15  ;;  %v494_v20 = vadd.f32 %v493_v13, %v492_v11 }
 0x2e5   :  { %v478_v21 = vsel %vm436_vm14, %v468_v16, 0.0  ;;  %v477_v22 = vsel %vm435_vm13, %v466_v58, 0.0 }
 0x2e6   :  { %v482_v23 = vsel %vm164_vm2, %v478_v21, 0.0  ;;  %v481_v28 = vsel %vm160_vm3, %v477_v22, 0.0  ;;  %v495_v30 = vrot.slane %v494_v20, 2 }
 0x2e7   :  { %v483_v29 = vadd.f32 %v482_v23, %v481_v28 }
 0x2e8   :  { %v496_v33 = vadd.f32 %v495_v30, %v494_v20 }
 0x2e9   :  { %v484_v31 = vrot.slane %v483_v29, 4 }
 0x2ea   :  { %v497_v40 = vrot.slane %v496_v33, 1 }
 0x2eb   :  { %v485_v32 = vadd.f32 %v484_v31, %v483_v29 }
 0x2ec   :  { %v1080_v44 = vadd.f32 %v497_v40, %v496_v33 }
 0x2ed   :  { %v486_v35 = vrot.slane %v485_v32, 2 }
 0x2ee   :  { %v500_v47 = vadd.f32 %v1080_v44, %v1022_v18 }
 0x2ef   :  { %v487_v39 = vadd.f32 %v486_v35, %v485_v32 }
 0x2f0   :  { %v502_v51 = vmul.f32 0.33333334, %v500_v47 }
 0x2f1   :  { %v488_v41 = vrot.slane %v487_v39, 1 }
 0x2f2   :  { %v506_v52 = vperm.slane %v502_v51, 0 }
 0x2f3   :  { %v1078_v43 = vadd.f32 %v488_v41, %v487_v39 }
 0x2f4   :  { %v511_v18 = vrot.slane %v506_v52, 4  ;;  %v512_v54 = vrot.slane %v506_v52, 6 }
 0x2f5   :  { %v499_v45 = vadd.f32 %v1078_v43, %v1007_v7  ;;  %v510_v7 = vrot.slane %v506_v52, 2 }
 0x2f7   :  { %v501_v46 = vmul.f32 0.33333334, %v499_v45 }
 0x2f9   :  { %v505_v48 = vperm.slane %v501_v46, 0 }
 0x2fb   :  { %513 = vrot.lane.b32.xlu2 %v505_v48, %s836_s29  ;;  %v507_v49 = vrot.slane %v505_v48, 2  ;;  %v508_v50 = vrot.slane %v505_v48, 4  ;;  %v509_v53 = vrot.slane %v505_v48, 6 }
 0x2fd   :  { %515 = vrot.lane.b32.xlu0 %v507_v49, %s836_s29  ;;  %517 = vrot.lane.b32.xlu1 %v508_v50, %s836_s29 }
 0x303   :  { %519 = vrot.lane.b32.xlu2 %v509_v53, %s836_s29 }
 0x305   :  { %521 = vrot.lane.b32.xlu0 %v506_v52, %s836_s29  ;;  %523 = vrot.lane.b32.xlu1 %v510_v7, %s836_s29 }
 0x30b   :  { %525 = vrot.lane.b32.xlu2 %v511_v18, %s836_s29 }
 0x30d   :  { %527 = vrot.lane.b32.xlu0 %v512_v54, %s836_s29 }
 0x355   :  { %v514_v55 = vpop.permute.xlu2 %513 }
 0x356   :  { %v537_v58 = vmul.f32 %v514_v55, %v920_v19  ;;  %v541_v59 = vmul.f32 %v514_v55, %v922_v24 }
 0x358   :  { %557 = vst [vmem:[#allocation1] ss:$4 sm:$0xff] %v537_v58 }
 0x359   :  { %565 = vst [vmem:[#allocation1 + $0x20] ss:$4 sm:$0xff] %v541_v59 }
 0x35d   :  { %v520_v56 = vpop.permute.xlu2 %519 }
 0x35e   :  { %v540_v57 = vmul.f32 %v520_v56, %v931_v27 }
 0x360   :  { %563 = vst [vmem:[#allocation1 + $0x3] ss:$4 sm:$0xff] %v540_v57  ;;  %v567_v60 = vld.sshfl [vmem:[#allocation1 + $0x20] sm:$0xff pattern:$0x73625140] }
 0x361   :  { %577 = vrot.lane.b32.xlu1 %v567_v60, %s837_s30 }
 0x365   :  { %v526_v5 = vpop.permute.xlu2 %525 }
 0x366   :  { %v544_v13 = vmul.f32 %v526_v5, %v954_v42 }
 0x36f   :  { %v516_v61 = vpop.permute.xlu0 %515  ;;  %v518_v62 = vpop.permute.xlu1 %517 }
 0x370   :  { %v538_v63 = vmul.f32 %v516_v61, %v925_v25  ;;  %v539_v0 = vmul.f32 %v518_v62, %v928_v26 }
 0x372   :  { %559 = vst [vmem:[#allocation1 + $0x1] ss:$4 sm:$0xff] %v538_v63 }
 0x373   :  { %561 = vst [vmem:[#allocation1 + $0x2] ss:$4 sm:$0xff] %v539_v0 }
 0x377   :  { %v522_v1 = vpop.permute.xlu0 %521  ;;  %v524_v2 = vpop.permute.xlu1 %523 }
 0x378   :  { %v542_v8 = vmul.f32 %v522_v1, %v947_v37  ;;  %v546_v9 = vmul.f32 %v522_v1, %v944_v36  ;;  %v543_v11 = vmul.f32 %v524_v2, %v950_v38 }
 0x37a   :  { %572 = vst [vmem:[#allocation1 + $0x20] ss:$4 sm:$0xff] %v546_v9  ;;  %v566_v12 = vld.sshfl [vmem:[#allocation1] sm:$0xff pattern:$0x73625140] }
 0x37b   :  { %575 = vrot.lane.b32.xlu0 %v566_v12, %s837_s30  ;;  %568 = vst [vmem:[#allocation1] ss:$4 sm:$0xff] %v542_v8 }
 0x37c   :  { %569 = vst [vmem:[#allocation1 + $0x1] ss:$4 sm:$0xff] %v543_v11 }
 0x37d   :  { %570 = vst [vmem:[#allocation1 + $0x2] ss:$4 sm:$0xff] %v544_v13 }
 0x37f   :  { %v528_v15 = vpop.permute.xlu0 %527 }
 0x380   :  { %v545_v16 = vmul.f32 %v528_v15, %v938_v34 }
 0x381   :  { %v574_v20 = vld.sshfl [vmem:[#allocation1 + $0x20] sm:$0xff pattern:$0x73625140] }
 0x382   :  { %571 = vst [vmem:[#allocation1 + $0x3] ss:$4 sm:$0xff] %v545_v16  ;;  %581 = vrot.lane.b32.xlu2 %v574_v20, %s837_s30 }
 0x383   :  { %671 = vst [vmem:[#allocation1 + $0x20] ss:$4 sm:$0xff] %v922_v24 }
 0x389   :  { %v573_v21 = vld.sshfl [vmem:[#allocation1] sm:$0xff pattern:$0x73625140] }
 0x38a   :  { %v673_v22 = vld.sshfl [vmem:[#allocation1 + $0x20] sm:$0xff pattern:$0x73625140]  ;;  %579 = vrot.lane.b32.xlu1 %v573_v21, %s837_s30  ;;  %663 = vst [vmem:[#allocation1] ss:$4 sm:$0xff] %v920_v19 }
 0x38b   :  { %678 = vst [vmem:[#allocation1 + $0x20] ss:$4 sm:$0xff] %v944_v36 }
 0x38c   :  { %665 = vst [vmem:[#allocation1 + $0x1] ss:$4 sm:$0xff] %v925_v25 }
 0x38d   :  { %667 = vst [vmem:[#allocation1 + $0x2] ss:$4 sm:$0xff] %v928_v26 }
 0x38e   :  { %669 = vst [vmem:[#allocation1 + $0x3] ss:$4 sm:$0xff] %v931_v27 }
 0x392   :  { %v680_v28 = vld.sshfl [vmem:[#allocation1 + $0x20] sm:$0xff pattern:$0x73625140] }
 0x395   :  { %v672_v23 = vld.sshfl [vmem:[#allocation1] sm:$0xff pattern:$0x73625140] }
 0x396   :  { %681 = vrot.lane.b32.xlu0 %v672_v23, %s837_s30  ;;  %674 = vst [vmem:[#allocation1] ss:$4 sm:$0xff] %v947_v37 }
 0x397   :  { %675 = vst [vmem:[#allocation1 + $0x1] ss:$4 sm:$0xff] %v950_v38 }
 0x398   :  { %676 = vst [vmem:[#allocation1 + $0x2] ss:$4 sm:$0xff] %v954_v42 }
 0x399   :  { %677 = vst [vmem:[#allocation1 + $0x3] ss:$4 sm:$0xff] %v938_v34 }
 0x3a0   :  { %v679_v38 = vld.sshfl [vmem:[#allocation1] sm:$0xff pattern:$0x73625140] }
 0x3d3   :  { %v578_v19 = vpop.permute.xlu1 %577 }
 0x3d4   :  { %v590_v24 = vsel %vm164_vm2, %v578_v19, 0.0 }
 0x3d5   :  { %591 = vadd.xlane.f32.xlu2 %v590_v24 }
 0x3dc   :  { %v582_v25 = vpop.permute.xlu2 %581 }
 0x3dd   :  { %v596_v26 = vsel %vm164_vm2, %v582_v25, 0.0 }
 0x3de   :  { %597 = vadd.xlane.f32.xlu0 %v596_v26 }
 0x3ed   :  { %v576_v27 = vpop.permute.xlu0 %575 }
 0x3ee   :  { %v587_v36 = vsel %vm160_vm3, %v576_v27, 0.0 }
 0x3ef   :  { %588 = vadd.xlane.f32.xlu1 %v587_v36 }
 0x3f2   :  { %687 = vrot.lane.b32.xlu0 %v680_v28, %s837_s30 }
 0x3fa   :  { %719 = vrot.lane.b32.xlu0 %v1016_v17, %s834_s28 }
 0x3fc   :  { %v580_v37 = vpop.permute.xlu1 %579 }
 0x3fd   :  { %v593_v34 = vsel %vm160_vm3, %v580_v37, 0.0 }
 0x3fe   :  { %594 = vadd.xlane.f32.xlu2 %v593_v34 }
 0x408   :  { %683 = vrot.lane.b32.xlu1 %v673_v22, %s837_s30  ;;  %v682_v32 = vpop.permute.xlu0 %681 }
 0x410   :  { %717 = vrot.lane.b32.xlu1 %v1003_v6, %s834_s28 }
 0x416   :  { %685 = vrot.lane.b32.xlu2 %v679_v38, %s837_s30 }
 0x418   :  { %727 = vrot.lane.b32.xlu1 %v1080_v44, %s836_s29 }
 0x41e   :  { %725 = vrot.lane.b32.xlu2 %v1078_v43, %s836_s29 }
 0x448   :  { %v592_v42 = vpop.xlane.xlu2 %591 }
 0x449   :  { %v599_v17 = vsel %vm174_vm4, %v592_v42, -inf }
 0x451   :  { %v598_v40 = vpop.xlane.xlu0 %597 }
 0x452   :  { %v607_v45 = vsel %vm174_vm4, %v598_v40, -inf }
 0x462   :  { %v589_v29 = vpop.xlane.xlu1 %588 }
 0x463   :  { %v600_v30 = vmax.f32 %v589_v29, %v599_v17 }
 0x464   :  { %v688_v27 = vpop.permute.xlu0 %687 }
 0x465   :  { %v601_v31 = vrot.slane %v600_v30, 4 }
 0x467   :  { %v602_v33 = vmax.f32 %v600_v30, %v601_v31 }
 0x469   :  { %v603_v35 = vrot.slane %v602_v33, 2 }
 0x46b   :  { %v604_v39 = vmax.f32 %v602_v33, %v603_v35 }
 0x46d   :  { %v605_v6 = vrot.slane %v604_v39, 1 }
 0x46f   :  { %v606_v41 = vmax.f32 %v604_v39, %v605_v6  ;;  %v720_v39 = vpop.permute.xlu0 %719 }
 0x471   :  { %vm615_vm15 = vcmp.ge.f32.partialorder %v589_v29, %v606_v41  ;;  %vm616_vm0 = vcmp.ge.f32.partialorder %v592_v42, %v606_v41  ;;  %v595_v44 = vpop.xlane.xlu2 %594 }
 0x472   :  { %v619_v43 = vsel %vm615_vm15, %v978_v4, 10  ;;  %v620_v46 = vsel %vm616_vm0, %v981_v10, 10  ;;  %v608_v47 = vmax.f32 %v595_v44, %v607_v45 }
 0x473   :  { %v623_v48 = vsel %vm174_vm4, %v620_v46, 2147483647 }
 0x474   :  { %vm624_vm1 = vcmp.lt.s32.totalorder %v619_v43, %v623_v48  ;;  %v609_v49 = vrot.slane %v608_v47, 4 }
 0x475   :  { %v625_v50 = vsel %vm624_vm1, %v619_v43, %v623_v48 }
 0x476   :  { %v626_v51 = vrot.slane %v625_v50, 4  ;;  %v610_v52 = vmax.f32 %v608_v47, %v609_v49 }
 0x478   :  { %vm627_vm5 = vcmp.lt.s32.totalorder %v625_v50, %v626_v51  ;;  %v611_v53 = vrot.slane %v610_v52, 2 }
 0x479   :  { %v628_v7 = vsel %vm627_vm5, %v625_v50, %v626_v51  ;;  %v686_v36 = vpop.permute.xlu2 %685 }
 0x47a   :  { %v629_v18 = vrot.slane %v628_v7, 2  ;;  %v612_v54 = vmax.f32 %v610_v52, %v611_v53  ;;  %v684_v1 = vpop.permute.xlu1 %683 }
 0x47c   :  { %v613_v55 = vrot.slane %v612_v54, 1  ;;  %vm630_vm6 = vcmp.lt.s32.totalorder %v628_v7, %v629_v18 }
 0x47d   :  { %v631_v58 = vsel %vm630_vm6, %v628_v7, %v629_v18  ;;  %vm744_vm6 = vcmask 392192  }
 0x47e   :  { %v614_v59 = vmax.f32 %v612_v54, %v613_v55  ;;  %v632_v56 = vrot.slane %v631_v58, 1 }
 0x480   :  { %vm617_vm7 = vcmp.ge.f32.partialorder %v595_v44, %v614_v59  ;;  %vm618_vm8 = vcmp.ge.f32.partialorder %v598_v40, %v614_v59  ;;  %vm633_vm9 = vcmp.lt.s32.totalorder %v631_v58, %v632_v56  ;;  %v740_v40 = vsel %vm160_vm3, %v1013_v14, %v720_v39 }
 0x481   :  { %v621_v57 = vsel %vm617_vm7, %v978_v4, 10  ;;  %v622_v60 = vsel %vm618_vm8, %v981_v10, 10  ;;  %v634_v61 = vsel %vm633_vm9, %v631_v58, %v632_v56  ;;  %vm747_vm7 = vcmask 516096  }
 0x482   :  { %v635_v62 = vsel %vm174_vm4, %v622_v60, 2147483647  ;;  %vm647_vm10 = vcmp.ge.s32.totalorder %v634_v61, 10 }
 0x483   :  { %vm636_vm11 = vcmp.lt.s32.totalorder %v621_v57, %v635_v62  ;;  %v649_v63 = vsel %vm647_vm10, 0, %v634_v61 }
 0x484   :  { %v637_v0 = vsel %vm636_vm11, %v621_v57, %v635_v62  ;;  %vm651_vm12 = vcmp.eq.s32.totalorder %v978_v4, %v649_v63  ;;  %vm652_vm13 = vcmp.eq.s32.totalorder %v981_v10, %v649_v63 }
 0x485   :  { %v638_v2 = vrot.slane %v637_v0, 4  ;;  %v693_v5 = vsel %vm651_vm12, %v682_v32, 0.0  ;;  %v694_v8 = vsel %vm652_vm13, %v684_v1, 0.0 }
 0x486   :  { %v697_v9 = vsel %vm160_vm3, %v693_v5, 0.0  ;;  %v698_v11 = vsel %vm164_vm2, %v694_v8, 0.0 }
 0x487   :  { %vm639_vm14 = vcmp.lt.s32.totalorder %v637_v0, %v638_v2  ;;  %v699_v12 = vadd.f32 %v698_v11, %v697_v9 }
 0x488   :  { %v640_v13 = vsel %vm639_vm14, %v637_v0, %v638_v2 }
 0x489   :  { %v641_v15 = vrot.slane %v640_v13, 2  ;;  %v700_v16 = vrot.slane %v699_v12, 4 }
 0x48b   :  { %v701_v20 = vadd.f32 %v700_v16, %v699_v12  ;;  %vm642_vm4 = vcmp.lt.s32.totalorder %v640_v13, %v641_v15 }
 0x48c   :  { %v643_v21 = vsel %vm642_vm4, %v640_v13, %v641_v15 }
 0x48d   :  { %v702_v22 = vrot.slane %v701_v20, 2  ;;  %v644_v23 = vrot.slane %v643_v21, 1 }
 0x48f   :  { %vm645_vm15 = vcmp.lt.s32.totalorder %v643_v21, %v644_v23  ;;  %v703_v19 = vadd.f32 %v702_v22, %v701_v20 }
 0x490   :  { %v646_v24 = vsel %vm645_vm15, %v643_v21, %v644_v23 }
 0x491   :  { %vm648_vm0 = vcmp.ge.s32.totalorder %v646_v24, 10  ;;  %v704_v25 = vrot.slane %v703_v19, 1 }
 0x492   :  { %v650_v26 = vsel %vm648_vm0, 0, %v646_v24 }
 0x493   :  { %vm653_vm1 = vcmp.eq.s32.totalorder %v978_v4, %v650_v26  ;;  %vm654_vm5 = vcmp.eq.s32.totalorder %v981_v10, %v650_v26  ;;  %v705_v28 = vadd.f32 %v704_v25, %v703_v19  ;;  %v718_v4 = vpop.permute.xlu1 %717  ;;  %v726_v10 = vpop.permute.xlu2 %725 }
 0x494   :  { %v696_v37 = vsel %vm654_vm5, %v688_v27, 0.0  ;;  %v695_v34 = vsel %vm653_vm1, %v686_v36, 0.0  ;;  %v739_v43 = vsel %vm160_vm3, %v1001_v3, %v718_v4 }
 0x495   :  { %v707_v38 = vsel %vm164_vm2, %v696_v37, 0.0  ;;  %v706_v42 = vsel %vm160_vm3, %v695_v34, 0.0  ;;  %733 = vrot.lane.b32.xlu0 %v705_v28, %s838_s5  ;;  %vm741_vm2 = vcmask 261120  }
 0x496   :  { %v708_v17 = vadd.f32 %v707_v38, %v706_v42  ;;  %v742_v46 = vsel %vm741_vm2, %v739_v43, %v726_v10 }
 0x498   :  { %v709_v29 = vrot.slane %v708_v17, 4 }
 0x49a   :  { %v710_v30 = vadd.f32 %v709_v29, %v708_v17 }
 0x49b   :  { %v728_v6 = vpop.permute.xlu1 %727 }
 0x49c   :  { %v711_v31 = vrot.slane %v710_v30, 2  ;;  %v743_v41 = vsel %vm741_vm2, %v740_v40, %v728_v6 }
 0x49e   :  { %v712_v32 = vadd.f32 %v711_v31, %v710_v30 }
 0x4a0   :  { %v713_v33 = vrot.slane %v712_v32, 1 }
 0x4a2   :  { %v714_v35 = vadd.f32 %v713_v33, %v712_v32 }
 0x4a4   :  { %735 = vrot.lane.b32.xlu2 %v714_v35, %s838_s5 }
 0x4fe   :  { %v736_v45 = vpop.permute.xlu2 %735 }
 0x4ff   :  { %v746_v44 = vsel %vm744_vm6, %v743_v41, %v736_v45 }
 0x500   :  { %749 = vst.msk [vmem:[#allocation2 + $0x1] sm:$0x1] %vm747_vm7, %v746_v44 }
 0x507   :  { %v734_v47 = vpop.permute.xlu0 %733 }
 0x508   :  { %v745_v14 = vsel %vm744_vm6, %v742_v46, %v734_v47 }
 0x509   :  { %748 = vst.msk [vmem:[#allocation2] sm:$0x1] %vm747_vm7, %v745_v14 }
 0x50a   :  { %762 = dma.vmem_to_hbm [thread:$0]  %s755_s10, 32, %s757_s8, [#allocation3], %s834_s28, %s834_s28, %s840_s11  }
 0x50b   :  { %832 = dma.done.wait [#allocation3], 32  }
 0x50c   :  { %833 = vsyncadd [#allocation3], 4294967264 }
 0x50d   :  { %767 = vsyncpa [#allocation3], 1 }

</bundles_post_ra>
